<compile_context>
chip_gen: v5e
topology: v5e:2x2
jax: 0.10.0
libtpu: 0.0.40
codegen_flags: <defaults>
</compile_context>

<pallas_src>
import jax
import jax.numpy as jnp
from jax.experimental import pallas as pl
from jax.experimental.pallas import tpu as pltpu

_LANES = 128
_MAX_TILE_ROWS = 512  # 512 sublanes x 128 lanes = 65536 voxels per grid step


def _make_conv1x1_kernel(c_in, c_out):
    def kernel(w_ref, b_ref, x_ref, o_ref):
        # w_ref: SMEM (c_out, c_in) f32, b_ref: SMEM (c_out,) f32
        # x_ref: VMEM (1, c_in, tile_rows, 128)
        # o_ref: VMEM (1, c_out, tile_rows, 128)
        xs = [x_ref[0, ci, :, :] for ci in range(c_in)]  # lane-dense 2D slabs
        for co in range(c_out):
            acc = xs[0] * w_ref[co, 0]
            for ci in range(1, c_in):
                acc = acc + xs[ci] * w_ref[co, ci]
            o_ref[0, co, :, :] = (acc + b_ref[co]).astype(o_ref.dtype)

    return kernel


def conv1x1_channel_major(x3, w2, b, *, max_tile_rows=_MAX_TILE_ROWS):
    """Per-voxel channel mix.

    x3: (N, C_in, S) channel-major (spatial flattened, contiguous last axis)
    w2: (C_out, C_in)
    b : (C_out,)
    returns (N, C_out, S)
    """
    n, c_in, s = x3.shape
    c_out = w2.shape[0]

    # Lane-align the spatial axis and pick a tile: the whole spatial extent if
    # small, otherwise max_tile_rows x 128 voxels per grid step.
    rows = pl.cdiv(s, _LANES)
    if rows <= max_tile_rows:
        tile_rows = rows                       # full-extent block (always legal)
    else:
        tile_rows = max_tile_rows              # multiple of 8
        rows = pl.cdiv(rows, tile_rows) * tile_rows
    s_pad = rows * _LANES
    if s_pad != s:
        x3 = jnp.pad(x3, ((0, 0), (0, 0), (0, s_pad - s)))

    x4 = x3.reshape(n, c_in, rows, _LANES)     # pure reshape, no data movement
    grid = (n, rows // tile_rows)

    out4 = pl.pallas_call(
        _make_conv1x1_kernel(c_in, c_out),
        out_shape=jax.ShapeDtypeStruct((n, c_out, rows, _LANES), x3.dtype),
        grid_spec=pltpu.PrefetchScalarGridSpec(
            num_scalar_prefetch=0,
            grid=grid,
            in_specs=[
                # Tiny weight/bias tables live in SMEM as scalar multipliers.
                pl.BlockSpec(memory_space=pltpu.MemorySpace.SMEM),
                pl.BlockSpec(memory_space=pltpu.MemorySpace.SMEM),
                # Lane-dense spatial tile of the activations.
                pl.BlockSpec((1, c_in, tile_rows, _LANES),
                             lambda i, j: (i, 0, j, 0)),
            ],
            out_specs=pl.BlockSpec((1, c_out, tile_rows, _LANES),
                                   lambda i, j: (i, 0, j, 0)),
        ),
        compiler_params=pltpu.CompilerParams(
            dimension_semantics=("parallel", "parallel")),
    )(w2.astype(jnp.float32), b.astype(jnp.float32), x4)

    out3 = out4.reshape(n, c_out, s_pad)
    if s_pad != s:
        out3 = out3[:, :, :s]
    return out3


def output_layer_forward(x_ncdhw, weight, bias):
    """Equivalent of OutputLayer.forward (Conv3d k=1,s=1,p=0 + bias).

    x_ncdhw: (N, C_in, D, H, W)
    weight : (C_out, C_in, 1, 1, 1)   (PyTorch Conv3d weight layout)
    bias   : (C_out,)
    returns (N, C_out, D, H, W)
    """
    n, c_in, d, h, w = x_ncdhw.shape
    c_out = weight.shape[0]
    # NCDHW is already channel-major with contiguous spatial -> pure reshapes.
    x3 = x_ncdhw.reshape(n, c_in, d * h * w)
    w2 = weight.reshape(c_out, c_in)
    y3 = conv1x1_channel_major(x3, w2, bias)
    return y3.reshape(n, c_out, d, h, w)


def _reference(x, weight, bias):
    c_out, c_in = weight.shape[0], weight.shape[1]
    return (jnp.einsum("ncdhw,oc->nodhw", x, weight.reshape(c_out, c_in))
            + bias.reshape(1, c_out, 1, 1, 1))


if __name__ == "__main__":
    key = jax.random.PRNGKey(0)
    k_x, k_w, k_b, k_x2 = jax.random.split(key, 4)

    # Small shapes consistent with the module: batch=2, in_channels=4,
    # n_class=3, spatial 8x8x8 (S = 512, a multiple of 128 -> no padding).
    N, C_IN, N_CLASS, D, H, W = 2, 4, 3, 8, 8, 8
    x = jax.random.normal(k_x, (N, C_IN, D, H, W), dtype=jnp.float32)
    weight = jax.random.normal(k_w, (N_CLASS, C_IN, 1, 1, 1), dtype=jnp.float32) * 0.1
    bias = jax.random.normal(k_b, (N_CLASS,), dtype=jnp.float32) * 0.1

    out = jax.block_until_ready(output_layer_forward(x, weight, bias))
    ref = _reference(x, weight, bias)
    assert out.shape == (N, N_CLASS, D, H, W)
    assert jnp.allclose(out, ref, atol=1e-5, rtol=1e-5)

    # Ragged spatial size (S = 5*6*7 = 210, not a multiple of 128) exercises
    # the cdiv + zero-padding path.
    x2 = jax.random.normal(k_x2, (1, C_IN, 5, 6, 7), dtype=jnp.float32)
    out2 = jax.block_until_ready(output_layer_forward(x2, weight, bias))
    ref2 = _reference(x2, weight, bias)
    assert out2.shape == (1, N_CLASS, 5, 6, 7)
    assert jnp.allclose(out2, ref2, atol=1e-5, rtol=1e-5)

    # TODO(synk): mllog_event(WEIGHTS_INITIALIZATION) in __init__ is a logging
    # side-effect with no kernel equivalent; omitted.
    print("KERNEL_OK")
</pallas_src>

<mosaic_0001>
module attributes {stable_mosaic.version = 11 : i64} {
  func.func @kernel(%arg0: i32, %arg1: i32, %arg2: memref<3x4xf32, #tpu.memory_space<smem>>, %arg3: memref<3xf32, #tpu.memory_space<smem>>, %arg4: memref<1x4x4x128xf32, #tpu.memory_space<vmem>>, %arg5: memref<1x3x4x128xf32, #tpu.memory_space<vmem>>) attributes {dimension_semantics = [#tpu.dimension_semantics<parallel>, #tpu.dimension_semantics<parallel>], iteration_bounds = array<i64: 2, 1>, scalar_prefetch = 0 : i64, scratch_operands = 0 : i64, tpu.core_type = #tpu.core_type<tc>, window_params = [{transform_indices = @transform_0, window_bounds = array<i64: 3, 4>}, {transform_indices = @transform_1, window_bounds = array<i64: 3>}, {transform_indices = @transform_2, window_bounds = array<i64: 1, 4, 4, 128>}, {transform_indices = @transform_3, window_bounds = array<i64: 1, 3, 4, 128>}]} {
    %c0 = arith.constant 0 : index
    %c0_0 = arith.constant 0 : index
    %c0_1 = arith.constant 0 : index
    %c0_2 = arith.constant 0 : index
    %0 = vector.load %arg4[%c0, %c0_0, %c0_1, %c0_2] : memref<1x4x4x128xf32, #tpu.memory_space<vmem>>, vector<1x1x4x128xf32>
    %1 = vector.shape_cast %0 : vector<1x1x4x128xf32> to vector<4x128xf32>
    %c0_3 = arith.constant 0 : index
    %c1 = arith.constant 1 : index
    %c0_4 = arith.constant 0 : index
    %c0_5 = arith.constant 0 : index
    %2 = vector.load %arg4[%c0_3, %c1, %c0_4, %c0_5] : memref<1x4x4x128xf32, #tpu.memory_space<vmem>>, vector<1x1x4x128xf32>
    %3 = vector.shape_cast %2 : vector<1x1x4x128xf32> to vector<4x128xf32>
    %c0_6 = arith.constant 0 : index
    %c2 = arith.constant 2 : index
    %c0_7 = arith.constant 0 : index
    %c0_8 = arith.constant 0 : index
    %4 = vector.load %arg4[%c0_6, %c2, %c0_7, %c0_8] : memref<1x4x4x128xf32, #tpu.memory_space<vmem>>, vector<1x1x4x128xf32>
    %5 = vector.shape_cast %4 : vector<1x1x4x128xf32> to vector<4x128xf32>
    %c0_9 = arith.constant 0 : index
    %c3 = arith.constant 3 : index
    %c0_10 = arith.constant 0 : index
    %c0_11 = arith.constant 0 : index
    %6 = vector.load %arg4[%c0_9, %c3, %c0_10, %c0_11] : memref<1x4x4x128xf32, #tpu.memory_space<vmem>>, vector<1x1x4x128xf32>
    %7 = vector.shape_cast %6 : vector<1x1x4x128xf32> to vector<4x128xf32>
    %c0_12 = arith.constant 0 : index
    %c0_13 = arith.constant 0 : index
    %8 = memref.load %arg2[%c0_12, %c0_13] : memref<3x4xf32, #tpu.memory_space<smem>>
    %9 = vector.broadcast %8 : f32 to vector<4x128xf32>
    %10 = arith.mulf %1, %9 : vector<4x128xf32>
    %c0_14 = arith.constant 0 : index
    %c1_15 = arith.constant 1 : index
    %11 = memref.load %arg2[%c0_14, %c1_15] : memref<3x4xf32, #tpu.memory_space<smem>>
    %12 = vector.broadcast %11 : f32 to vector<4x128xf32>
    %13 = arith.mulf %3, %12 : vector<4x128xf32>
    %14 = arith.addf %10, %13 : vector<4x128xf32>
    %c0_16 = arith.constant 0 : index
    %c2_17 = arith.constant 2 : index
    %15 = memref.load %arg2[%c0_16, %c2_17] : memref<3x4xf32, #tpu.memory_space<smem>>
    %16 = vector.broadcast %15 : f32 to vector<4x128xf32>
    %17 = arith.mulf %5, %16 : vector<4x128xf32>
    %18 = arith.addf %14, %17 : vector<4x128xf32>
    %c0_18 = arith.constant 0 : index
    %c3_19 = arith.constant 3 : index
    %19 = memref.load %arg2[%c0_18, %c3_19] : memref<3x4xf32, #tpu.memory_space<smem>>
    %20 = vector.broadcast %19 : f32 to vector<4x128xf32>
    %21 = arith.mulf %7, %20 : vector<4x128xf32>
    %22 = arith.addf %18, %21 : vector<4x128xf32>
    %c0_20 = arith.constant 0 : index
    %23 = memref.load %arg3[%c0_20] : memref<3xf32, #tpu.memory_space<smem>>
    %24 = vector.broadcast %23 : f32 to vector<4x128xf32>
    %25 = arith.addf %22, %24 : vector<4x128xf32>
    %c0_21 = arith.constant 0 : index
    %c0_22 = arith.constant 0 : index
    %c0_23 = arith.constant 0 : index
    %c0_24 = arith.constant 0 : index
    %26 = vector.load %arg5[%c0_21, %c0_22, %c0_23, %c0_24] : memref<1x3x4x128xf32, #tpu.memory_space<vmem>>, vector<1x1x4x128xf32>
    %27 = vector.shape_cast %26 : vector<1x1x4x128xf32> to vector<4x128xf32>
    %28 = vector.shape_cast %25 : vector<4x128xf32> to vector<1x1x4x128xf32>
    tpu.vector_store %arg5[%c0_21, %c0_22, %c0_23, %c0_24], %28 {strides = array<i32>} : memref<1x3x4x128xf32, #tpu.memory_space<vmem>>, vector<1x1x4x128xf32>,
    %c1_25 = arith.constant 1 : index
    %c0_26 = arith.constant 0 : index
    %29 = memref.load %arg2[%c1_25, %c0_26] : memref<3x4xf32, #tpu.memory_space<smem>>
    %30 = vector.broadcast %29 : f32 to vector<4x128xf32>
    %31 = arith.mulf %1, %30 : vector<4x128xf32>
    %c1_27 = arith.constant 1 : index
    %c1_28 = arith.constant 1 : index
    %32 = memref.load %arg2[%c1_27, %c1_28] : memref<3x4xf32, #tpu.memory_space<smem>>
    %33 = vector.broadcast %32 : f32 to vector<4x128xf32>
    %34 = arith.mulf %3, %33 : vector<4x128xf32>
    %35 = arith.addf %31, %34 : vector<4x128xf32>
    %c1_29 = arith.constant 1 : index
    %c2_30 = arith.constant 2 : index
    %36 = memref.load %arg2[%c1_29, %c2_30] : memref<3x4xf32, #tpu.memory_space<smem>>
    %37 = vector.broadcast %36 : f32 to vector<4x128xf32>
    %38 = arith.mulf %5, %37 : vector<4x128xf32>
    %39 = arith.addf %35, %38 : vector<4x128xf32>
    %c1_31 = arith.constant 1 : index
    %c3_32 = arith.constant 3 : index
    %40 = memref.load %arg2[%c1_31, %c3_32] : memref<3x4xf32, #tpu.memory_space<smem>>
    %41 = vector.broadcast %40 : f32 to vector<4x128xf32>
    %42 = arith.mulf %7, %41 : vector<4x128xf32>
    %43 = arith.addf %39, %42 : vector<4x128xf32>
    %c1_33 = arith.constant 1 : index
    %44 = memref.load %arg3[%c1_33] : memref<3xf32, #tpu.memory_space<smem>>
    %45 = vector.broadcast %44 : f32 to vector<4x128xf32>
    %46 = arith.addf %43, %45 : vector<4x128xf32>
    %c0_34 = arith.constant 0 : index
    %c1_35 = arith.constant 1 : index
    %c0_36 = arith.constant 0 : index
    %c0_37 = arith.constant 0 : index
    %47 = vector.load %arg5[%c0_34, %c1_35, %c0_36, %c0_37] : memref<1x3x4x128xf32, #tpu.memory_space<vmem>>, vector<1x1x4x128xf32>
    %48 = vector.shape_cast %47 : vector<1x1x4x128xf32> to vector<4x128xf32>
    %49 = vector.shape_cast %46 : vector<4x128xf32> to vector<1x1x4x128xf32>
    tpu.vector_store %arg5[%c0_34, %c1_35, %c0_36, %c0_37], %49 {strides = array<i32>} : memref<1x3x4x128xf32, #tpu.memory_space<vmem>>, vector<1x1x4x128xf32>,
    %c2_38 = arith.constant 2 : index
    %c0_39 = arith.constant 0 : index
    %50 = memref.load %arg2[%c2_38, %c0_39] : memref<3x4xf32, #tpu.memory_space<smem>>
    %51 = vector.broadcast %50 : f32 to vector<4x128xf32>
    %52 = arith.mulf %1, %51 : vector<4x128xf32>
    %c2_40 = arith.constant 2 : index
    %c1_41 = arith.constant 1 : index
    %53 = memref.load %arg2[%c2_40, %c1_41] : memref<3x4xf32, #tpu.memory_space<smem>>
    %54 = vector.broadcast %53 : f32 to vector<4x128xf32>
    %55 = arith.mulf %3, %54 : vector<4x128xf32>
    %56 = arith.addf %52, %55 : vector<4x128xf32>
    %c2_42 = arith.constant 2 : index
    %c2_43 = arith.constant 2 : index
    %57 = memref.load %arg2[%c2_42, %c2_43] : memref<3x4xf32, #tpu.memory_space<smem>>
    %58 = vector.broadcast %57 : f32 to vector<4x128xf32>
    %59 = arith.mulf %5, %58 : vector<4x128xf32>
    %60 = arith.addf %56, %59 : vector<4x128xf32>
    %c2_44 = arith.constant 2 : index
    %c3_45 = arith.constant 3 : index
    %61 = memref.load %arg2[%c2_44, %c3_45] : memref<3x4xf32, #tpu.memory_space<smem>>
    %62 = vector.broadcast %61 : f32 to vector<4x128xf32>
    %63 = arith.mulf %7, %62 : vector<4x128xf32>
    %64 = arith.addf %60, %63 : vector<4x128xf32>
    %c2_46 = arith.constant 2 : index
    %65 = memref.load %arg3[%c2_46] : memref<3xf32, #tpu.memory_space<smem>>
    %66 = vector.broadcast %65 : f32 to vector<4x128xf32>
    %67 = arith.addf %64, %66 : vector<4x128xf32>
    %c0_47 = arith.constant 0 : index
    %c2_48 = arith.constant 2 : index
    %c0_49 = arith.constant 0 : index
    %c0_50 = arith.constant 0 : index
    %68 = vector.load %arg5[%c0_47, %c2_48, %c0_49, %c0_50] : memref<1x3x4x128xf32, #tpu.memory_space<vmem>>, vector<1x1x4x128xf32>
    %69 = vector.shape_cast %68 : vector<1x1x4x128xf32> to vector<4x128xf32>
    %70 = vector.shape_cast %67 : vector<4x128xf32> to vector<1x1x4x128xf32>
    tpu.vector_store %arg5[%c0_47, %c2_48, %c0_49, %c0_50], %70 {strides = array<i32>} : memref<1x3x4x128xf32, #tpu.memory_space<vmem>>, vector<1x1x4x128xf32>,
    return
  }
  func.func @transform_0(%arg0: i32, %arg1: i32) -> (i32, i32) {
    %c0_i32 = arith.constant 0 : i32
    %c0_i32_0 = arith.constant 0 : i32
    %c0_i32_1 = arith.constant 0 : i32
    return %c0_i32, %c0_i32_0 : i32, i32
  }
  func.func @transform_1(%arg0: i32, %arg1: i32) -> i32 {
    %c0_i32 = arith.constant 0 : i32
    %c0_i32_0 = arith.constant 0 : i32
    return %c0_i32 : i32
  }
  func.func @transform_2(%arg0: i32, %arg1: i32) -> (i32, i32, i32, i32) {
    %c0_i32 = arith.constant 0 : i32
    %c0_i32_0 = arith.constant 0 : i32
    %c0_i32_1 = arith.constant 0 : i32
    return %arg0, %c0_i32, %arg1, %c0_i32_0 : i32, i32, i32, i32
  }
  func.func @transform_3(%arg0: i32, %arg1: i32) -> (i32, i32, i32, i32) {
    %c0_i32 = arith.constant 0 : i32
    %c0_i32_0 = arith.constant 0 : i32
    %c0_i32_1 = arith.constant 0 : i32
    return %arg0, %c0_i32, %arg1, %c0_i32_0 : i32, i32, i32, i32
  }
}

</mosaic_0001>

<bundles_post_ra>
// kernel: tpu_custom_call.1
= control target key start
LH: loop header
LB: loop body
LE: loop exit
PB: predicated region body
PF: predicated region fallthrough
CT: control target
= control target key end

     0   :  { %s892_s0 = inlined_call_operand.hbm [shape: f32[3,4], index: 0, kind: input, shape index: {}]   ;;  %s893_s1 = inlined_call_operand.hbm [shape: f32[3], index: 1, kind: input, shape index: {}]   ;;  %s894_s2 = inlined_call_operand.hbm [shape: f32[2,4,4,128], index: 2, kind: input, shape index: {}]   ;;  %s895_s3 = inlined_call_operand.hbm [shape: f32[2,3,4,128], index: 3, kind: output, shape index: {}]  }
   0x1   :  { %896 = sst [smem:[#allocation14_spill]] %s892_s0 }
   0x2   :  { %8 = vsyncpa [#allocation5], 0 }
   0x3   :  { %9 = vsyncpa [#allocation7], 0 }
   0x4   :  { %10 = vsyncpa [#allocation3], 0 }
   0x5   :  { %12 = vsyncpa [#allocation3 + $0x1], 0 }
   0x6   :  { %13 = vsyncpa [#allocation4], 0 }
   0x7   :  { %15 = vsyncpa [#allocation4 + $0x1], 0  ;;  %s727_s12 = smov 0   ;;  %s729_s13 = smov 0  }
   0x8   :  { %s731_s14 = smov 0   ;;  %s733_s15 = smov 0  }
   0x9   :  { %s735_s16 = smov 0   ;;  %s737_s17 = smov 0  }
   0xa LB: > { %s425_s18 = sadd.s32 4294967295, %s699_s17   ;;  %s426_s19 = sadd.s32 4294967294, %s699_s17   ;;  %s699_s17 = sphi %s737_s17, %s21_s17   ;;  %s695_s16 = sphi %s735_s16, %s909_s16   ;;  %s691_s15 = sphi %s733_s15, %s908_s15   ;;  %s687_s14 = sphi %s731_s14, %s907_s14   ;;  %s683_s13 = sphi %s729_s13, %s906_s13   ;;  %s679_s12 = sphi %s727_s12, %s905_s12  }
   0xb   : > { %s84_s20 = sadd.s32 1, %s687_s14  ;;  %p91_p0 = scmp.ne.s32.totalorder %s687_s14, %s683_s13 }
   0xc   : > { %p92_p1 = scmp.eq.s32.totalorder %s699_s17, 0  ;;  %p97_p2 = scmp.ne.s32.totalorder %s683_s13, %s679_s12 }
   0xd   : > { %p765_p3 = scmp.eq.s32.totalorder %s425_s18, 0  ;;  %p123_p4 = scmp.eq.s32.totalorder %s425_s18, 1 }
   0xe   : > { %p769_p5 = por %p92_p1, %p91_p0  ;;  %p129_p6 = scmp.eq.s32.totalorder %s426_s19, 1 }
   0xf   : > { %p775_p7 = por %p765_p3, %p97_p2  ;;  %p779_p8 = por %p123_p4, %p91_p0 }
  0x10   : > { %p783_p9 = por %p129_p6, %p97_p2  ;;  %p427_p10 = scmp.ge.s32.totalorder %s699_s17, 1 }
  0x11   : > { %p136_p11 = scmp.lt.s32.totalorder %s699_s17, 3  ;;  %s902_s0 = sld [smem:[#allocation14_spill]] }
  0x12   : > { %p430_p13 = scmp.ge.s32.totalorder %s699_s17, 2  ;;  %p491_p0 = scmp.lt.s32.totalorder %s699_s17, 2 }
  0x13   : > { %p792_p12 = pnand %p427_p10, %p136_p11  ;;  %s158_s5 = sshll.u32 %s893_s1, 4  ;;  %s159_s5 = int_to_ptr.hbm [resolvable:$true] %s158_s5 }
  0x14   : > { %p805_p2 = pnand %p491_p0, %p769_p5  ;;  %s701_s7 = smov [#allocation2]  }
  0x15   : > { %p474_p1 = pneg %p792_p12  ;;  %s702_s8 = smov [#allocation6]  }
  0x16   : > { %s33_s9 = sadd.s32 1, %s695_s16  ;;  %s169_s10 = sand.u32 1, %s687_s14  }
  0x17   : > { %s148_s28 = sshll.u32 %s902_s0, 4  ;;  %p475_p4 = pnand %p474_p1, %p765_p3  ;;  %s149_s28 = int_to_ptr.hbm [resolvable:$true] %s148_s28 }
  0x18   : > { %p35_p6 = scmp.ge.s32.totalorder %s33_s9, 2  ;;  %s431_s11 = sshll.u32 %s169_s10, 4 }
  0x19   : > { %477 = dma.hbm_to_smem (!%p475_p4), %s149_s28, 64, %s701_s7, [#allocation5]  }
  0x1a   : > { %480 = dma.hbm_to_smem (!%p475_p4), %s159_s5, 16, %s702_s8, [#allocation7]  }
  0x1b   : > { %s459_s18 = sshll.u32 %s695_s16, 4  ;;  %s911_s9 = smov (%p35_p6, %s33_s9), 0 }
  0x1c   : > { %s179_s26 = scalar_lea.hbm %s894_s2, %s459_s18  ;;  %s79_s27 = ssub.s32 %s695_s16, %s911_s9 }
  0x1d   : > { %s180_s30 = sshll.u32 %s179_s26, 4  ;;  %p82_p5 = scmp.eq.s32.totalorder %s79_s27, 0  ;;  %s181_s30 = int_to_ptr.hbm [resolvable:$true] %s180_s30 }
  0x1e   : > { %s173_s28 = scalar_lea.vmem [#allocation8], %s431_s11  ;;  %s170_s7 = scalar_lea.sflag [#allocation3], %s169_s10 }
  0x1f   : > { %s182_s4 = sshll.u32 %s173_s28, 4  ;;  %s703_s8 = smov 64   ;;  %s183_s4 = int_to_ptr.vmem [resolvable:$true] %s182_s4 }
  0x20   : > { %s824_s5 = scalar_select %p82_p5, %s687_s14, %s84_s20  }
  0x21   : > { %s704_s0 = smov 4   ;;  %194 = sbr.rel (%p792_p12) target bundleno = 79 (0x4f), region = 32 }
  0x22   : > { %484 = dma.hbm_to_vmem [thread:$0]  (!%p805_p2), %s181_s30, 256, %s183_s4, %s170_s7, %s703_s8, %s703_s8, %s704_s0  }
  0x26   : > { %662 = dma.done.wait (%p765_p3), [#allocation5], 64  }
  0x27   : > { %664 = vsyncadd (%p765_p3), [#allocation5], 4294967232 }
  0x28   : > { %666 = dma.done.wait (%p765_p3), [#allocation7], 16  }
  0x29   : > { %668 = vsyncadd (%p765_p3), [#allocation7], 4294967280  ;;  %s839_s20 = sand.u32 1, %s683_s13  }
  0x2a   : > { %s437_s0 = sshll.u32 %s839_s20, 4  ;;  %s207_s29 = scalar_lea.sflag [#allocation3], %s839_s20 }
  0x2b   : > { %s210_s6 = scalar_lea.vmem [#allocation8], %s437_s0 }
  0x2c   : > { %670 = dma.done.wait (%p775_p7), %s207_s29, 256  }
  0x2d   : > { %672 = vsyncadd (%p775_p7), %s207_s29, 4294967040 }
  0x2e   : > { %216 = sfence }
  0x2f   : > { %s242_s10 = sld [smem:[#allocation2]]  ;;  %v235_v0 = vld [vmem:[%s210_s6] sm:$0xf]  ;;  %v438_v1 = vld [vmem:[%s210_s6 + $0x4] sm:$0xf]  ;;  %s460_s4 = smul.u32 12, %s839_s20 }
  0x30   : > { %s441_s11 = sld [smem:[#allocation2 + $0x1]]  ;;  %v439_v2 = vld [vmem:[%s210_s6 + $0x8] sm:$0xf]  ;;  %v440_v4 = vld [vmem:[%s210_s6 + $0xc] sm:$0xf]  ;;  %s461_s6 = smul.u32 12, %s691_s15 }
  0x31   : > { %s442_s18 = sld [smem:[#allocation2 + $0x2]] }
  0x32   : > { %s443_s21 = sld [smem:[#allocation2 + $0x3]] }
  0x33   : > { %s847_s19 = sld [smem:[#allocation6]] }
  0x34   : > { %s444_s22 = sld [smem:[#allocation2 + $0x80]] }
  0x35   : > { %v243_v3 = vstv %s242_s10  ;;  %s445_s26 = sld [smem:[#allocation2 + $0x81]]  ;;  %s234_s10 = scalar_lea.vmem [#allocation9], %s460_s4 }
  0x36   : > { %v244_v5 = vmul.f32 %v243_v3, %v235_v0  ;;  %v246_v6 = vstv %s441_s11  ;;  %s446_s27 = sld [smem:[#allocation2 + $0x82]]  ;;  %s315_s15 = sshll.u32 %s234_s10, 4  ;;  %s316_s15 = int_to_ptr.vmem [resolvable:$true] %s315_s15 }
  0x37   : > { %v247_v7 = vmul.f32 %v438_v1, %v246_v6  ;;  %v250_v8 = vstv %s442_s18  ;;  %s447_s23 = sld [smem:[#allocation2 + $0x83]] }
  0x38   : > { %v251_v9 = vmul.f32 %v439_v2, %v250_v8  ;;  %v254_v10 = vstv %s443_s21  ;;  %s849_s30 = sld [smem:[#allocation6 + $0x1]]  ;;  %s314_s21 = scalar_lea.hbm %s895_s3, %s461_s6 }
  0x39   : > { %v248_v11 = vadd.f32 %v247_v7, %v244_v5  ;;  %v255_v12 = vmul.f32 %v440_v4, %v254_v10  ;;  %s450_s28 = sld [smem:[#allocation2 + $0x100]]  ;;  %v258_v17 = vstv %s847_s19  ;;  %s317_s19 = sshll.u32 %s314_s21, 4  ;;  %s318_s19 = int_to_ptr.hbm [resolvable:$true] %s317_s19 }
  0x3a   : > { %v262_v13 = vstv %s444_s22  ;;  %s451_s7 = sld [smem:[#allocation2 + $0x101]]  ;;  %s302_s22 = scalar_lea.sflag [#allocation4], %s839_s20 }
  0x3b   : > { %v252_v14 = vadd.f32 %v251_v9, %v248_v11  ;;  %v263_v15 = vmul.f32 %v262_v13, %v235_v0  ;;  %v265_v16 = vstv %s445_s26  ;;  %s452_s8 = sld [smem:[#allocation2 + $0x102]]  ;;  %s623_s26 = sshra.s32 %s318_s19, 4  ;;  %s624_s26 = int_to_ptr.hbm [resolvable:$true] %s623_s26 }
  0x3c   : > { %v266_v18 = vmul.f32 %v438_v1, %v265_v16  ;;  %v269_v19 = vstv %s446_s27  ;;  %s453_s0 = sld [smem:[#allocation2 + $0x103]]  ;;  %s625_s27 = scalar_lea.hbm %s624_s26, 12 }
  0x3d   : > { %v256_v20 = vadd.f32 %v255_v12, %v252_v14  ;;  %v270_v21 = vmul.f32 %v439_v2, %v269_v19  ;;  %v273_v22 = vstv %s447_s23  ;;  %s454_s29 = sld [smem:[#allocation6 + $0x2]]  ;;  %p626_p3 = scmp.ne.s32.totalorder %s624_s26, %s625_s27 }
  0x3e   : > { %v267_v23 = vadd.f32 %v266_v18, %v263_v15  ;;  %v274_v24 = vmul.f32 %v440_v4, %v273_v22  ;;  %v277_v30 = vstv %s849_s30  ;;  %p630_p11 = scmp.lt.s32.totalorder %s624_s26, %s895_s3 }
  0x3f   : > { %v259_v25 = vadd.f32 %v258_v17, %v256_v20  ;;  %v282_v26 = vstv %s450_s28  ;;  %p627_p7 = pnand %p626_p3, %p779_p8  ;;  %s629_s28 = scalar_lea.hbm %s895_s3, 24 }
  0x40   : > { %v271_v27 = vadd.f32 %v270_v21, %v267_v23  ;;  %v283_v28 = vmul.f32 %v282_v26, %v235_v0  ;;  %v285_v29 = vstv %s451_s7  ;;  %p631_p12 = scmp.lt.s32.totalorder %s629_s28, %s625_s27 }
  0x41   : > { %260 = vst [vmem:[%s234_s10] sm:$0xf] %v259_v25  ;;  %v286_v31 = vmul.f32 %v438_v1, %v285_v29  ;;  %v289_v32 = vstv %s452_s8  ;;  %p628_p10 = pneg %p627_p7 }
  0x42   : > { %v275_v33 = vadd.f32 %v274_v24, %v271_v27  ;;  %v290_v34 = vmul.f32 %v439_v2, %v289_v32  ;;  %v293_v35 = vstv %s453_s0  ;;  %p632_p0 = por %p631_p12, %p630_p11 }
  0x43   : > { %v287_v36 = vadd.f32 %v286_v31, %v283_v28  ;;  %v294_v37 = vmul.f32 %v440_v4, %v293_v35  ;;  %v297_v40 = vstv %s454_s29 }
  0x44   : > { %v278_v38 = vadd.f32 %v277_v30, %v275_v33  ;;  %p633_p1 = pnand %p632_p0, %p628_p10 }
  0x45   : > { %v291_v39 = vadd.f32 %v290_v34, %v287_v36 }
  0x46   : > { %449 = vst [vmem:[%s234_s10 + $0x4] sm:$0xf] %v278_v38 }
  0x47   : > { %v295_v41 = vadd.f32 %v294_v37, %v291_v39 }
  0x49   : > { %v298_v42 = vadd.f32 %v297_v40, %v295_v41 }
  0x4b   : > { %455 = vst [vmem:[%s234_s10 + $0x8] sm:$0xf] %v298_v42 }
  0x4c   : > { %636 = shalt.err (!%p633_p1)
}
  0x4d   : > { %s705_s20 = smov 64   ;;  %s706_s8 = smov 4  }
  0x4e   : > { %472 = dma.vmem_to_hbm [thread:$0]  (%p779_p8), %s316_s15, 192, %s318_s19, %s302_s22, %s705_s20, %s705_s20, %s706_s8  }
  0x4f PF: > { %s332_s0 = sand.u32 1, %s679_s12   ;;  %p486_p2 = pnand %p430_p13, %p783_p9 }
  0x50   : > { %s333_s29 = scalar_lea.sflag [#allocation4], %s332_s0 }
  0x51   : > { %p487_p4 = pneg %p486_p2 }
  0x53   : > { %674 = dma.done.wait (%p487_p4), %s333_s29, 192  }
  0x54   : > { %676 = vsyncadd (%p487_p4), %s333_s29, 4294967104  ;;  %s21_s17 = sadd.s32 1, %s699_s17   ;;  %s905_s12 = smov %s683_s13 }
  0x55   : > { %p18_p6 = scmp.ge.s32.totalorder %s21_s17, 4   ;;  %s906_s13 = smov %s687_s14 }
  0x56   : > { %s907_s14 = smov %s824_s5  ;;  %s908_s15 = smov %s695_s16 }
  0x57   : > { %s909_s16 = smov %s911_s9  ;;  %20 = sbr.rel (!%p18_p6) target bundleno = 10 (0xa), region = 91 }
  0x5c   :  { %339 = vsyncpa [#allocation3], 1 }
  0x5d   :  { %341 = vsyncpa [#allocation3 + $0x1], 1 }
  0x5e   :  { %342 = vsyncpa [#allocation4], 1 }
  0x5f   :  { %344 = vsyncpa [#allocation4 + $0x1], 1 }
  0x60   :  { %345 = vsyncpa [#allocation5], 1 }
  0x61   :  { %347 = vsyncpa [#allocation5 + $0x1], 1 }
  0x62   :  { %348 = vsyncpa [#allocation7], 1 }

</bundles_post_ra>
